<compile_context>
chip_gen: v7x
topology: tpu7x:2x2x1
jax: 0.10.0
libtpu: 0.0.40
codegen_flags: <defaults>
</compile_context>

<pallas_src>
import jax
import jax.numpy as jnp
from jax import lax
from jax.experimental import pallas as pl
from jax.experimental.pallas import tpu as pltpu

# ---- problem sizes (fixed by the module instantiation used here) ----
B = 2                         # batch
N = 8                         # sequence length (latents)
BN = B * N                    # flattened rows
DIM = 32                      # model dim
HEADS = 4                     # heads
DIM_HEAD = 16                 # per-head dim
DIM_INNER = HEADS * DIM_HEAD  # 64
HB = HEADS * BN               # head-stacked rows = 64
SCALE = DIM_HEAD ** (-0.5)    # 0.25 (exact in bf16)


def attention_kernel(x_ref, wqkv_ref, wo_ref, bias_ref, o_ref):
    """Single invocation over all batches and heads.

    x_ref    : (BN, DIM)           VMEM f32   (flattened batch*seq)
    wqkv_ref : (DIM, 3*DIM_INNER)  VMEM bf16  (Q columns pre-scaled by SCALE)
    wo_ref   : (DIM_INNER, DIM)    VMEM bf16
    bias_ref : (HB, HB)            VMEM f32   (0 / -1e30 head+batch block-diag)
    o_ref    : (BN, DIM)           VMEM f32
    """
    x = x_ref[...].astype(jnp.bfloat16)                       # (BN, DIM)

    # Fused Q/K/V projection: one MXU matmul, f32 accumulation.
    qkv = jnp.dot(x, wqkv_ref[...],
                  preferred_element_type=jnp.float32)         # (BN, 3*DIM_INNER)
    q = qkv[:, :DIM_INNER]                                    # already scaled
    k = qkv[:, DIM_INNER:2 * DIM_INNER]
    v = qkv[:, 2 * DIM_INNER:]

    def stack_heads(t):
        # (BN, DIM_INNER) -> (HEADS*BN, DIM_HEAD), rows ordered [head][batch*seq]
        return jnp.concatenate(
            [t[:, h * DIM_HEAD:(h + 1) * DIM_HEAD] for h in range(HEADS)],
            axis=0)

    q_s = stack_heads(q).astype(jnp.bfloat16)                 # (HB, DH)
    k_s = stack_heads(k).astype(jnp.bfloat16)                 # (HB, DH)
    v_s = stack_heads(v).astype(jnp.bfloat16)                 # (HB, DH)

    # One fused similarity for all heads & batches; K consumed un-transposed.
    sim = lax.dot_general(q_s, k_s,
                          dimension_numbers=(((1,), (1,)), ((), ())),
                          preferred_element_type=jnp.float32)  # (HB, HB)
    # Additive block-diagonal bias (block size N) enforces same-head AND
    # same-batch attention on the stacked rows.
    sim = sim + bias_ref[...]

    # Softmax (f32 elementwise; exp/recip on the EUP slot).
    m = jnp.max(sim, axis=-1, keepdims=True)
    p = jnp.exp(sim - m)
    inv_denom = pl.reciprocal(jnp.sum(p, axis=-1, keepdims=True), approx=True)

    o_s = jnp.dot(p.astype(jnp.bfloat16), v_s,
                  preferred_element_type=jnp.float32)          # (HB, DH)
    o_s = o_s * inv_denom                                      # normalize after p@v

    # Un-stack heads back to (BN, DIM_INNER) via lane-concat of row blocks,
    # then a single output projection.
    o_wide = jnp.concatenate(
        [o_s[h * BN:(h + 1) * BN, :] for h in range(HEADS)], axis=1)  # (BN, DIM_INNER)

    out = jnp.dot(o_wide.astype(jnp.bfloat16), wo_ref[...],
                  preferred_element_type=jnp.float32)          # (BN, DIM)

    # TODO(synk): output last dim is 32 (<128 lanes) -> masked stores; only
    # fixable by batching more rows/sequences per call (DIM fixed by module).
    o_ref[...] = out.astype(o_ref.dtype)


def prepare_weights(wq, wkv, wo):
    """One-time weight/mask prep (hoisted out of the per-call path).

    wq  : (DIM_INNER, DIM)      nn.Linear weight (out, in)
    wkv : (2*DIM_INNER, DIM)
    wo  : (DIM, DIM_INNER)
    Returns fused bf16 (DIM, 3*DIM_INNER) QKV weight with the softmax scale
    baked into the Q columns, bf16 (DIM_INNER, DIM) output weight, and the
    (HB, HB) additive block-diagonal mask bias.
    """
    wqkv = jnp.concatenate([wq.T * SCALE, wkv.T], axis=1).astype(jnp.bfloat16)
    wo_b = wo.T.astype(jnp.bfloat16)
    blk = jnp.arange(HB) // N                   # head*B + batch id per stacked row
    bias = jnp.where(blk[:, None] == blk[None, :], 0.0, -1e30).astype(jnp.float32)
    return wqkv, wo_b, bias


def attention_forward(x, wqkv, wo_b, bias):
    """x: (B, N, DIM) float32. wqkv/wo_b/bias from prepare_weights (cached)."""
    b, n, d = x.shape
    # Kernel is specialized to the module-level shapes (mask/head layout).
    assert (b, n, d) == (B, N, DIM), "kernel specialized to (B, N, DIM) globals"
    x_flat = x.reshape(b * n, DIM)              # free metadata reshape, stays f32

    out_flat = pl.pallas_call(
        attention_kernel,
        out_shape=jax.ShapeDtypeStruct((BN, DIM), jnp.float32),
        grid_spec=pltpu.PrefetchScalarGridSpec(
            num_scalar_prefetch=0,
            grid=(1,),
            in_specs=[
                pl.BlockSpec((BN, DIM), lambda i: (0, 0)),
                pl.BlockSpec((DIM, 3 * DIM_INNER), lambda i: (0, 0)),
                pl.BlockSpec((DIM_INNER, DIM), lambda i: (0, 0)),
                pl.BlockSpec((HB, HB), lambda i: (0, 0)),
            ],
            out_specs=pl.BlockSpec((BN, DIM), lambda i: (0, 0)),
        ),
        compiler_params=pltpu.CompilerParams(
            dimension_semantics=("arbitrary",)),
    )(x_flat, wqkv, wo_b, bias)

    return out_flat.reshape(b, n, DIM)


def reference_forward(x, wq_t, wkv_t, wo_t):
    """Pure-JAX f32 reference mirroring the PyTorch forward."""
    q = x @ wq_t                                  # (B, N, DIM_INNER)
    kv = x @ wkv_t                                # (B, N, 2*DIM_INNER)
    k, v = kv[..., :DIM_INNER], kv[..., DIM_INNER:]

    def split_heads(t):
        return t.reshape(B, N, HEADS, DIM_HEAD).transpose(0, 2, 1, 3)

    qh, kh, vh = map(split_heads, (q, k, v))
    sim = jnp.einsum('bhid,bhjd->bhij', qh, kh) * SCALE
    attn = jax.nn.softmax(sim, axis=-1)
    out = jnp.einsum('bhij,bhjd->bhid', attn, vh)
    out = out.transpose(0, 2, 1, 3).reshape(B, N, DIM_INNER)
    return out @ wo_t


if __name__ == "__main__":
    key = jax.random.PRNGKey(0)
    kx, kq, kkv, ko = jax.random.split(key, 4)

    x = jax.random.normal(kx, (B, N, DIM), dtype=jnp.float32)

    # nn.Linear stores weight as (out, in); all three Linears use bias=False.
    wq = jax.random.normal(kq, (DIM_INNER, DIM), dtype=jnp.float32) * 0.05
    wkv = jax.random.normal(kkv, (2 * DIM_INNER, DIM), dtype=jnp.float32) * 0.05
    wo = jax.random.normal(ko, (DIM, DIM_INNER), dtype=jnp.float32) * 0.05

    # One-time prep (hoisted out of the per-call path).
    wqkv_f, wo_f, bias = prepare_weights(wq, wkv, wo)
    wqkv_f, wo_f, bias = jax.block_until_ready((wqkv_f, wo_f, bias))

    out = attention_forward(x, wqkv_f, wo_f, bias)
    out = jax.block_until_ready(out)

    ref = reference_forward(x, wq.T, wkv.T, wo.T)
    assert out.shape == (B, N, DIM)
    # Tolerance relaxed vs pure-f32: inputs/weights go through bf16 at MXU
    # boundaries (f32 accumulation) and the softmax denominator uses the
    # approximate EUP reciprocal — intentional for inference-quality output.
    assert jnp.allclose(out, ref, atol=2e-2, rtol=2e-2), "mismatch vs reference"

    # TODO(synk): context / key-padding mask / causal / dropout branches of
    # Attend are not exercised (module defaults: causal=False, dropout=0.0,
    # no mask, self-attention). NOTE: -1e30 masking assumes every row has at
    # least N unmasked keys (true for the block-diagonal self-attn mask).
    print("KERNEL_OK")
</pallas_src>

<mosaic_0001>
module attributes {stable_mosaic.version = 11 : i64} {
  func.func @attention_kernel(%arg0: i32, %arg1: memref<16x32xf32, #tpu.memory_space<vmem>>, %arg2: memref<32x192xbf16, #tpu.memory_space<vmem>>, %arg3: memref<64x32xbf16, #tpu.memory_space<vmem>>, %arg4: memref<64x64xf32, #tpu.memory_space<vmem>>, %arg5: memref<16x32xf32, #tpu.memory_space<vmem>>) attributes {dimension_semantics = [#tpu.dimension_semantics<arbitrary>], iteration_bounds = array<i64: 1>, scalar_prefetch = 0 : i64, scratch_operands = 0 : i64, tpu.core_type = #tpu.core_type<tc>, window_params = [{pipeline_mode = #tpu.pipeline_mode<synchronous>, transform_indices = @transform_0, window_bounds = array<i64: 16, 32>}, {pipeline_mode = #tpu.pipeline_mode<synchronous>, transform_indices = @transform_1, window_bounds = array<i64: 32, 192>}, {pipeline_mode = #tpu.pipeline_mode<synchronous>, transform_indices = @transform_2, window_bounds = array<i64: 64, 32>}, {pipeline_mode = #tpu.pipeline_mode<synchronous>, transform_indices = @transform_3, window_bounds = array<i64: 64, 64>}, {pipeline_mode = #tpu.pipeline_mode<synchronous>, transform_indices = @transform_4, window_bounds = array<i64: 16, 32>}]} {
    %c0 = arith.constant 0 : index
    %c0_0 = arith.constant 0 : index
    %0 = vector.load %arg1[%c0, %c0_0] : memref<16x32xf32, #tpu.memory_space<vmem>>, vector<16x32xf32>
    %1 = arith.truncf %0 : vector<16x32xf32> to vector<16x32xbf16>
    %c0_1 = arith.constant 0 : index
    %c0_2 = arith.constant 0 : index
    %2 = vector.load %arg2[%c0_1, %c0_2] : memref<32x192xbf16, #tpu.memory_space<vmem>>, vector<32x192xbf16>
    %cst = arith.constant dense<0.000000e+00> : vector<16x192xf32>
    %3 = tpu.matmul %1, %2, %cst {dimension_numbers = #tpu.dot_dimension_numbers<[1], [0], [0], [1], [0, 0, 1, 1], [], []>} : vector<16x32xbf16>, vector<32x192xbf16>, vector<16x192xf32> -> vector<16x192xf32>
    %4 = vector.extract_strided_slice %3 {offsets = [0, 0], sizes = [16, 64], strides = [1, 1]} : vector<16x192xf32> to vector<16x64xf32>
    %5 = vector.extract_strided_slice %3 {offsets = [0, 64], sizes = [16, 64], strides = [1, 1]} : vector<16x192xf32> to vector<16x64xf32>
    %6 = vector.extract_strided_slice %3 {offsets = [0, 128], sizes = [16, 64], strides = [1, 1]} : vector<16x192xf32> to vector<16x64xf32>
    %7 = vector.extract_strided_slice %4 {offsets = [0, 0], sizes = [16, 16], strides = [1, 1]} : vector<16x64xf32> to vector<16x16xf32>
    %8 = vector.extract_strided_slice %4 {offsets = [0, 16], sizes = [16, 16], strides = [1, 1]} : vector<16x64xf32> to vector<16x16xf32>
    %9 = vector.extract_strided_slice %4 {offsets = [0, 32], sizes = [16, 16], strides = [1, 1]} : vector<16x64xf32> to vector<16x16xf32>
    %10 = vector.extract_strided_slice %4 {offsets = [0, 48], sizes = [16, 16], strides = [1, 1]} : vector<16x64xf32> to vector<16x16xf32>
    %11 = tpu.concatenate %7, %8, %9, %10 in 0 : vector<16x16xf32>, vector<16x16xf32>, vector<16x16xf32>, vector<16x16xf32> -> vector<64x16xf32>
    %12 = arith.truncf %11 : vector<64x16xf32> to vector<64x16xbf16>
    %13 = vector.extract_strided_slice %5 {offsets = [0, 0], sizes = [16, 16], strides = [1, 1]} : vector<16x64xf32> to vector<16x16xf32>
    %14 = vector.extract_strided_slice %5 {offsets = [0, 16], sizes = [16, 16], strides = [1, 1]} : vector<16x64xf32> to vector<16x16xf32>
    %15 = vector.extract_strided_slice %5 {offsets = [0, 32], sizes = [16, 16], strides = [1, 1]} : vector<16x64xf32> to vector<16x16xf32>
    %16 = vector.extract_strided_slice %5 {offsets = [0, 48], sizes = [16, 16], strides = [1, 1]} : vector<16x64xf32> to vector<16x16xf32>
    %17 = tpu.concatenate %13, %14, %15, %16 in 0 : vector<16x16xf32>, vector<16x16xf32>, vector<16x16xf32>, vector<16x16xf32> -> vector<64x16xf32>
    %18 = arith.truncf %17 : vector<64x16xf32> to vector<64x16xbf16>
    %19 = vector.extract_strided_slice %6 {offsets = [0, 0], sizes = [16, 16], strides = [1, 1]} : vector<16x64xf32> to vector<16x16xf32>
    %20 = vector.extract_strided_slice %6 {offsets = [0, 16], sizes = [16, 16], strides = [1, 1]} : vector<16x64xf32> to vector<16x16xf32>
    %21 = vector.extract_strided_slice %6 {offsets = [0, 32], sizes = [16, 16], strides = [1, 1]} : vector<16x64xf32> to vector<16x16xf32>
    %22 = vector.extract_strided_slice %6 {offsets = [0, 48], sizes = [16, 16], strides = [1, 1]} : vector<16x64xf32> to vector<16x16xf32>
    %23 = tpu.concatenate %19, %20, %21, %22 in 0 : vector<16x16xf32>, vector<16x16xf32>, vector<16x16xf32>, vector<16x16xf32> -> vector<64x16xf32>
    %24 = arith.truncf %23 : vector<64x16xf32> to vector<64x16xbf16>
    %cst_3 = arith.constant dense<0.000000e+00> : vector<64x64xf32>
    %25 = tpu.matmul %12, %18, %cst_3 {dimension_numbers = #tpu.dot_dimension_numbers<[1], [1], [0], [0], [0, 0, 1, 0], [], []>} : vector<64x16xbf16>, vector<64x16xbf16>, vector<64x64xf32> -> vector<64x64xf32>
    %c0_4 = arith.constant 0 : index
    %c0_5 = arith.constant 0 : index
    %26 = vector.load %arg4[%c0_4, %c0_5] : memref<64x64xf32, #tpu.memory_space<vmem>>, vector<64x64xf32>
    %27 = arith.addf %25, %26 : vector<64x64xf32>
    %cst_6 = arith.constant dense<0xFF800000> : vector<64xf32>
    %28 = vector.multi_reduction <maximumf>, %27, %cst_6 [1] : vector<64x64xf32> to vector<64xf32>
    %29 = vector.shape_cast %28 : vector<64xf32> to vector<64x1xf32>
    %30 = vector.broadcast %29 : vector<64x1xf32> to vector<64x64xf32>
    %31 = arith.subf %27, %30 : vector<64x64xf32>
    %32 = math.exp %31 : vector<64x64xf32>
    %cst_7 = arith.constant dense<0.000000e+00> : vector<64xf32>
    %33 = vector.multi_reduction <add>, %32, %cst_7 [1] : vector<64x64xf32> to vector<64xf32>
    %34 = vector.shape_cast %33 : vector<64xf32> to vector<64x1xf32>
    %35 = tpu.reciprocal %34 {approx = true} : vector<64x1xf32> -> vector<64x1xf32>
    %36 = arith.truncf %32 : vector<64x64xf32> to vector<64x64xbf16>
    %cst_8 = arith.constant dense<0.000000e+00> : vector<64x16xf32>
    %37 = tpu.matmul %36, %24, %cst_8 {dimension_numbers = #tpu.dot_dimension_numbers<[1], [0], [0], [1], [0, 0, 1, 1], [], []>} : vector<64x64xbf16>, vector<64x16xbf16>, vector<64x16xf32> -> vector<64x16xf32>
    %38 = vector.broadcast %35 : vector<64x1xf32> to vector<64x16xf32>
    %39 = arith.mulf %37, %38 : vector<64x16xf32>
    %40 = vector.extract_strided_slice %39 {offsets = [0, 0], sizes = [16, 16], strides = [1, 1]} : vector<64x16xf32> to vector<16x16xf32>
    %41 = vector.extract_strided_slice %39 {offsets = [16, 0], sizes = [16, 16], strides = [1, 1]} : vector<64x16xf32> to vector<16x16xf32>
    %42 = vector.extract_strided_slice %39 {offsets = [32, 0], sizes = [16, 16], strides = [1, 1]} : vector<64x16xf32> to vector<16x16xf32>
    %43 = vector.extract_strided_slice %39 {offsets = [48, 0], sizes = [16, 16], strides = [1, 1]} : vector<64x16xf32> to vector<16x16xf32>
    %44 = tpu.concatenate %40, %41, %42, %43 in 1 : vector<16x16xf32>, vector<16x16xf32>, vector<16x16xf32>, vector<16x16xf32> -> vector<16x64xf32>
    %45 = arith.truncf %44 : vector<16x64xf32> to vector<16x64xbf16>
    %c0_9 = arith.constant 0 : index
    %c0_10 = arith.constant 0 : index
    %46 = vector.load %arg3[%c0_9, %c0_10] : memref<64x32xbf16, #tpu.memory_space<vmem>>, vector<64x32xbf16>
    %cst_11 = arith.constant dense<0.000000e+00> : vector<16x32xf32>
    %47 = tpu.matmul %45, %46, %cst_11 {dimension_numbers = #tpu.dot_dimension_numbers<[1], [0], [0], [1], [0, 0, 1, 1], [], []>} : vector<16x64xbf16>, vector<64x32xbf16>, vector<16x32xf32> -> vector<16x32xf32>
    %c0_12 = arith.constant 0 : index
    %c0_13 = arith.constant 0 : index
    %48 = vector.load %arg5[%c0_12, %c0_13] : memref<16x32xf32, #tpu.memory_space<vmem>>, vector<16x32xf32>
    tpu.vector_store %arg5[%c0_12, %c0_13], %47 {strides = array<i32>} : memref<16x32xf32, #tpu.memory_space<vmem>>, vector<16x32xf32>,
    return
  }
  func.func @transform_0(%arg0: i32) -> (i32, i32) {
    %c0_i32 = arith.constant 0 : i32
    %c0_i32_0 = arith.constant 0 : i32
    %c0_i32_1 = arith.constant 0 : i32
    return %c0_i32, %c0_i32_0 : i32, i32
  }
  func.func @transform_1(%arg0: i32) -> (i32, i32) {
    %c0_i32 = arith.constant 0 : i32
    %c0_i32_0 = arith.constant 0 : i32
    %c0_i32_1 = arith.constant 0 : i32
    return %c0_i32, %c0_i32_0 : i32, i32
  }
  func.func @transform_2(%arg0: i32) -> (i32, i32) {
    %c0_i32 = arith.constant 0 : i32
    %c0_i32_0 = arith.constant 0 : i32
    %c0_i32_1 = arith.constant 0 : i32
    return %c0_i32, %c0_i32_0 : i32, i32
  }
  func.func @transform_3(%arg0: i32) -> (i32, i32) {
    %c0_i32 = arith.constant 0 : i32
    %c0_i32_0 = arith.constant 0 : i32
    %c0_i32_1 = arith.constant 0 : i32
    return %c0_i32, %c0_i32_0 : i32, i32
  }
  func.func @transform_4(%arg0: i32) -> (i32, i32) {
    %c0_i32 = arith.constant 0 : i32
    %c0_i32_0 = arith.constant 0 : i32
    %c0_i32_1 = arith.constant 0 : i32
    return %c0_i32, %c0_i32_0 : i32, i32
  }
}

</mosaic_0001>

<bundles_post_ra>
// kernel: tpu_custom_call.1
= control target key start
LH: loop header
LB: loop body
LE: loop exit
PB: predicated region body
PF: predicated region fallthrough
CT: control target
= control target key end

     0   :  { %9 = vsyncpa [#allocation3], 0  ;;  %s956_s0 = inlined_call_operand.vmem [shape: f32[16,32], index: 0, kind: input, shape index: {}]   ;;  %s957_s1 = inlined_call_operand.vmem [shape: bf16[32,192], index: 1, kind: input, shape index: {}]   ;;  %s958_s2 = inlined_call_operand.vmem [shape: bf16[64,32], index: 2, kind: input, shape index: {}]   ;;  %s959_s3 = inlined_call_operand.hbm [shape: f32[64,64], index: 3, kind: input, shape index: {}]   ;;  %s960_s4 = inlined_call_operand.hbm [shape: f32[16,32], index: 4, kind: output, shape index: {}]  }
   0x1   :  { %10 = vsyncpa [#allocation4], 0  ;;  %s798_s15 = smov [#allocation2]   ;;  %s750_s19 = scalar_lea.hbm %s959_s3, 1024 }
   0x2   :  { %s22_s16 = sshll.u32 %s798_s15, 4  ;;  %p751_p0 = scmp.ne.s32.totalorder %s959_s3, %s750_s19  ;;  %s23_s16 = int_to_ptr.vmem [resolvable:$true] %s22_s16 }
   0x3   :  { %p754_p1 = scmp.lt.u32.totalorder %s750_s19, %s959_s3 }
   0x5   :  { %p756_p2 = pnand %p754_p1, %p751_p0 }
   0x7   :  { %759 = shalt.err (!%p756_p2)
}
   0x8   :  { %s760_s24 = scalar_lea.vmem %s23_s16, 1024  ;;  %p765_p4 = scmp.lt.s32.totalorder %s23_s16, %s23_s16 }
   0x9   :  { %p761_p3 = scmp.ne.s32.totalorder %s23_s16, %s760_s24  ;;  %p766_p5 = scmp.lt.s32.totalorder %s760_s24, %s760_s24 }
   0xb   :  { %p767_p6 = por %p766_p5, %p765_p4 }
   0xd   :  { %p768_p7 = pnand %p767_p6, %p761_p3 }
   0xf   :  { %771 = shalt.err (!%p768_p7)
}
  0x10   :  { %s799_s25 = smov 128   ;;  %s800_s26 = smov 8  }
  0x11   :  { %28 = dma.hbm_to_vmem [thread:$0]  %s959_s3, 1024, %s23_s16, [#allocation3], %s799_s25, %s799_s25, %s800_s26  }
  0x12   :  { %794 = dma.done.wait [#allocation3], 1024  }
  0x13   :  { %795 = vsyncadd [#allocation3], 4294966272  ;;  %v801_v0 = vmov 0   ;;  %v708_v1 = vld [vmem:[%s957_s1 + $0x4] ss:$8 sps:$4 sm:$0xff]   ;;  %vm60_vm0 = vcmask 261120  }
  0x14   :  { %96 = vmatprep.mubr.bf16.mxu0 %v801_v0  ;;  %v710_v2 = vld [vmem:[%s957_s1] ss:$8 sps:$4 sm:$0xff]   ;;  %64 = vmatprep.subr.bf16.mxu0 %v708_v1  ;;  %v711_v3 = vld [vmem:[%s957_s1 + $0x14] ss:$8 sps:$4 sm:$0xff]   ;;  %v713_v4 = vld [vmem:[%s957_s1 + $0x10] ss:$8 sps:$4 sm:$0xff]  }
  0x15   :  { %v33_v5 = vld [vmem:[%s956_s0] sm:$0xff]  ;;  %65 = vmatpush1.bf16.msra.mxu0 %v710_v2  ;;  %v34_v6 = vld [vmem:[%s956_s0 + $0x8] sm:$0xff]  ;;  %vm175_vm1 = vcmask 130048   ;;  %s802_s1 = smov 80   ;;  %s803_s0 = smov 112   ;;  %v157_v36 = vld [vmem:[#allocation2 + $0x10] sm:$0xff] }
  0x16   :  { %66 = vmatprep.subr.bf16.mxu0 %v711_v3  ;;  %v35_v7 = vpack.c.bf16 %v34_v6, %v33_v5  ;;  %s804_s14 = smov 96   ;;  %s805_s15 = smov 64   ;;  %v155_v37 = vld [vmem:[#allocation2] sm:$0xff]  ;;  %vm265_vm2 = vcmask 523264   ;;  %v158_v41 = vld [vmem:[#allocation2 + $0x18] sm:$0xff]  ;;  %v156_v42 = vld [vmem:[#allocation2 + $0x8] sm:$0xff] }
  0x17   :  { %v161_v50 = vld [vmem:[#allocation2 + $0x30] sm:$0xff]  ;;  %v159_v53 = vld [vmem:[#allocation2 + $0x20] sm:$0xff]  ;;  %v162_v62 = vld [vmem:[#allocation2 + $0x38] sm:$0xff]  ;;  %s807_s24 = smov 16   ;;  %vm808_vm3 = vmmov 0   ;;  %s810_s27 = smov 32  }
  0x18   :  { %v160_v0 = vld [vmem:[#allocation2 + $0x28] sm:$0xff]  ;;  %vm463_vm4 = vcmask 392192   ;;  %s811_s28 = smov [#allocation5]  }
  0x19   :  { %67 = vmatpush1.bf16.msra.mxu0 %v713_v4  ;;  %s550_s29 = sshll.u32 %s811_s28, 4  ;;  %s551_s29 = int_to_ptr.vmem [resolvable:$true] %s550_s29 }
  0x1a   :  { %s772_s30 = scalar_lea.vmem %s551_s29, 256  ;;  %p777_p9 = scmp.lt.s32.totalorder %s551_s29, %s551_s29 }
  0x1b   :  { %p773_p8 = scmp.ne.s32.totalorder %s551_s29, %s772_s30  ;;  %p778_p10 = scmp.lt.s32.totalorder %s772_s30, %s772_s30 }
  0x1c   :  { %566 = vmatmul.mubr.msk.bf16.vlgmr.msra.gmra.mrb[0].mxu0 %vm60_vm0, %v35_v7 }
  0x1d   :  { %p779_p11 = por %p778_p10, %p777_p9 }
  0x1f   :  { %p780_p12 = pnand %p779_p11, %p773_p8 }
  0xef   :  { %v98_v8 = vpop.f32.mrb[0].mxu0 }
  0xf0   :  { %v100_v9 = vpop.f32.mrb[1].mxu0 }
  0xf1   :  { %v102_v10 = vpop.f32.mrb[2].mxu0 }
  0xf2   :  { %v104_v11 = vpop.f32.mrb[3].mxu0  ;;  %v673_v12 = vpack.i.bf16 %v102_v10, %v98_v8  ;;  %v127_v13 = vpack.c.bf16 %v102_v10, %v98_v8 }
  0xf3   :  { %v151_v14 = vpack.c.bf16 %v104_v11, %v100_v9  ;;  %v871_v15 = vpack.i.bf16 %v104_v11, %v100_v9 }
  0xf4   :  { %674 = vrot.lane.b32.xlu1 %v673_v12, %s802_s1  ;;  %664 = vrot.lane.b32.xlu0 %v673_v12, %s803_s0 }
  0xf5   :  { %609 = vmatprep.mubr.msk.bf16.mxu1 %vm175_vm1, %v127_v13  ;;  %617 = vmatprep.subr.bf16.mxu0 %v151_v14 }
  0xf6   :  { %618 = vmatpush3.bf16.msra.mxu0 %v151_v14 }
  0xf8   :  { %669 = vrot.lane.b32.xlu0 %v673_v12, %s804_s14  ;;  %167 = vrot.lane.b32.xlu1 %v127_v13, %s805_s15 }
 0x166   :  { %v675_v16 = vpop.permute.xlu1 %674  ;;  %v665_v17 = vpop.permute.xlu0 %664 }
 0x167   :  { %v667_v18 = vunpack.i.h.bf16 %v665_v17  ;;  %v666_v19 = vunpack.i.l.bf16 %v665_v17  ;;  %v677_v20 = vunpack.i.h.bf16 %v675_v16  ;;  %v676_v21 = vunpack.i.l.bf16 %v675_v16 }
 0x169   :  { %v128_v22 = vpack.c.bf16 %v667_v18, %v666_v19  ;;  %v130_v28 = vpack.c.bf16 %v677_v20, %v676_v21 }
 0x16a   :  { %v670_v23 = vpop.permute.xlu0 %669  ;;  %v168_v24 = vpop.permute.xlu1 %167 }
 0x16b   :  { %v672_v25 = vunpack.i.h.bf16 %v670_v23  ;;  %v671_v26 = vunpack.i.l.bf16 %v670_v23  ;;  %169 = vrot.lane.b32.xlu0 %v128_v22, %s805_s15  ;;  %645 = vmatprep.subr.msk.bf16.mxu1 %vm175_vm1, %v168_v24  ;;  %v189_v27 = vsel %vm175_vm1, %v168_v24, 0 }
 0x16c   :  { %602 = vmatpush3.bf16.xpose.msra.mxu1 %v189_v27 }
 0x16d   :  { %v129_v29 = vpack.c.bf16 %v672_v25, %v671_v26 }
 0x16f   :  { %173 = vrot.lane.b32.xlu0 %v130_v28, %s805_s15  ;;  %171 = vrot.lane.b32.xlu1 %v129_v29, %s805_s15 }
 0x1dd   :  { %v170_v30 = vpop.permute.xlu0 %169 }
 0x1de   :  { %646 = vmatprep.subr.msk.bf16.mxu1 %vm175_vm1, %v170_v30  ;;  %v192_v31 = vsel %vm175_vm1, %v170_v30, 0 }
 0x1df   :  { %604 = vmatpush3.bf16.xpose.msra.mxu1 %v192_v31 }
 0x1e1   :  { %v172_v32 = vpop.permute.xlu1 %171  ;;  %v174_v34 = vpop.permute.xlu0 %173 }
 0x1e2   :  { %647 = vmatprep.subr.msk.bf16.mxu1 %vm175_vm1, %v172_v32  ;;  %v195_v33 = vsel %vm175_vm1, %v172_v32, 0  ;;  %v198_v35 = vsel %vm175_vm1, %v174_v34, 0 }
 0x1e7   :  { %606 = vmatpush3.bf16.xpose.msra.mxu1 %v195_v33 }
 0x1e8   :  { %648 = vmatprep.subr.msk.bf16.mxu1 %vm175_vm1, %v174_v34 }
 0x1ef   :  { %608 = vmatpush3.bf16.xpose.msra.mxu1 %v198_v35 }
 0x1f6   :  { %610 = vmatmul.mubr.msk.bf16.vlgmr.msra.gmra.mrb[0].mxu1 %vm175_vm1, %v128_v22 }
 0x1f7   :  { %613 = vmatprep.mubr.msk.bf16.mxu1 %vm175_vm1, %v129_v29 }
 0x1fe   :  { %614 = vmatmul.mubr.msk.bf16.gmra.mrb[4].mxu1 %vm175_vm1, %v130_v28 }
 0x2c9   :  { %v611_v38 = vpop.f32.mrb[0].mxu1 }
 0x2ca   :  { %v243_v39 = vadd.f32 %v611_v38, %v157_v36  ;;  %v234_v40 = vpop.f32.mrb[1].mxu1 }
 0x2cb   :  { %v235_v43 = vadd.f32 %v234_v40, %v155_v37  ;;  %v612_v44 = vpop.f32.mrb[2].mxu1 }
 0x2cc   :  { %v237_v45 = vpop.f32.mrb[3].mxu1  ;;  %v272_v46 = vsel %vm265_vm2, %v243_v39, -inf  ;;  %v246_v47 = vadd.f32 %v612_v44, %v158_v41 }
 0x2cd   :  { %v238_v48 = vadd.f32 %v237_v45, %v156_v42  ;;  %273 = vmax.xlane.f32.xlu0 %v272_v46  ;;  %v266_v49 = vsel %vm265_vm2, %v235_v43, -inf }
 0x2ce   :  { %267 = vmax.xlane.f32.xlu1 %v266_v49  ;;  %v275_v54 = vsel %vm265_vm2, %v246_v47, -inf }
 0x2cf   :  { %v269_v51 = vsel %vm265_vm2, %v238_v48, -inf }
 0x2d1   :  { %v615_v52 = vpop.f32.mrb[4].mxu1  ;;  %270 = vmax.xlane.f32.xlu0 %v269_v51 }
 0x2d2   :  { %v259_v55 = vadd.f32 %v615_v52, %v161_v50  ;;  %v250_v56 = vpop.f32.mrb[5].mxu1  ;;  %276 = vmax.xlane.f32.xlu1 %v275_v54 }
 0x2d3   :  { %v616_v57 = vpop.f32.mrb[6].mxu1  ;;  %v251_v58 = vadd.f32 %v250_v56, %v159_v53 }
 0x2d4   :  { %v253_v59 = vpop.f32.mrb[7].mxu1  ;;  %v284_v60 = vsel %vm265_vm2, %v259_v55, -inf  ;;  %v898_v63 = vadd.f32 %v616_v57, %v162_v62 }
 0x2d5   :  { %285 = vmax.xlane.f32.xlu0 %v284_v60  ;;  %v278_v61 = vsel %vm265_vm2, %v251_v58, -inf  ;;  %v900_v1 = vadd.f32 %v253_v59, %v160_v0  ;;  %v714_v60 = vld [vmem:[%s958_s2] sm:$0xff]  }
 0x2d6   :  { %v287_v2 = vsel %vm265_vm2, %v898_v63, -inf }
 0x2d7   :  { %v281_v3 = vsel %vm265_vm2, %v900_v1, -inf }
 0x2d9   :  { %279 = vmax.xlane.f32.xlu0 %v278_v61  ;;  %v806_v61 = vmov 0.0  }
 0x2e3   :  { %684 = vrot.lane.b32.xlu1 %v871_v15, %s804_s14 }
 0x2ef   :  { %679 = vrot.lane.b32.xlu0 %v871_v15, %s803_s0 }
 0x307   :  { %288 = vmax.xlane.f32.xlu1 %v287_v2 }
 0x30b   :  { %282 = vmax.xlane.f32.xlu1 %v281_v3  ;;  %v715_v3 = vld [vmem:[%s958_s2 + $0x8] sm:$0xff]  }
 0x31c   :  { %689 = vrot.lane.b32.xlu1 %v871_v15, %s802_s1 }
 0x35a   :  { %v274_v4 = vpop.xlane.xlu0 %273 }
 0x35b   :  { %v292_v5 = vsub.f32 %v243_v39, %v274_v4  ;;  %v268_v6 = vpop.xlane.xlu1 %267 }
 0x35c   :  { %v290_v7 = vsub.f32 %v235_v43, %v268_v6 }
 0x35d   :  { %v302_v8 = vmul.f32 1.442695, %v292_v5  ;;  %v716_v5 = vld [vmem:[%s958_s2 + $0x10] sm:$0xff]  }
 0x35e   :  { %v298_v9 = vmul.f32 1.442695, %v290_v7  ;;  %v271_v10 = vpop.xlane.xlu0 %270 }
 0x35f   :  { %718 = vpow2.f32 %v302_v8  ;;  %v291_v11 = vsub.f32 %v238_v48, %v271_v10  ;;  %v277_v12 = vpop.xlane.xlu1 %276 }
 0x360   :  { %v293_v13 = vsub.f32 %v246_v47, %v277_v12  ;;  %720 = vpow2.f32 %v298_v9 }
 0x361   :  { %v300_v14 = vmul.f32 1.442695, %v291_v11 }
 0x362   :  { %v304_v16 = vmul.f32 1.442695, %v293_v13  ;;  %v286_v17 = vpop.xlane.xlu0 %285 }
 0x363   :  { %722 = vpow2.f32 %v300_v14  ;;  %v296_v18 = vsub.f32 %v259_v55, %v286_v17  ;;  %v685_v22 = vpop.permute.xlu1 %684 }
 0x364   :  { %724 = vpow2.f32 %v304_v16  ;;  %v687_v29 = vunpack.i.h.bf16 %v685_v22  ;;  %v686_v30 = vunpack.i.l.bf16 %v685_v22  ;;  %v717_v16 = vld [vmem:[%s958_s2 + $0x18] sm:$0xff]   ;;  %s809_s2 = smov 48  }
 0x365   :  { %v310_v19 = vmul.f32 1.442695, %v296_v18 }
 0x366   :  { %v280_v15 = vpop.xlane.xlu0 %279  ;;  %v153_v36 = vpack.c.bf16 %v687_v29, %v686_v30 }
 0x367   :  { %726 = vpow2.f32 %v310_v19  ;;  %v294_v20 = vsub.f32 %v251_v58, %v280_v15 }
 0x369   :  { %v719_v21 = vpop.eup %718  ;;  %v306_v23 = vmul.f32 1.442695, %v294_v20 }
 0x36a   :  { %v680_v24 = vpop.permute.xlu0 %679  ;;  %v320_v25 = vsel %vm265_vm2, %v719_v21, 0.0  ;;  %v721_v28 = vpop.eup %720 }
 0x36b   :  { %728 = vpow2.f32 %v306_v23  ;;  %v682_v26 = vunpack.i.h.bf16 %v680_v24  ;;  %v681_v27 = vunpack.i.l.bf16 %v680_v24  ;;  %321 = vadd.xlane.f32.xlu0 %v320_v25  ;;  %v314_v41 = vsel %vm265_vm2, %v721_v28, 0.0 }
 0x36d   :  { %v723_v31 = vpop.eup %722  ;;  %v152_v32 = vpack.c.bf16 %v682_v26, %v681_v27 }
 0x36e   :  { %v725_v33 = vpop.eup %724  ;;  %v346_v34 = vpack.c.bf16 %v723_v31, %v721_v28  ;;  %v317_v59 = vsel %vm265_vm2, %v723_v31, 0.0 }
 0x36f   :  { %619 = vmatprep.subr.bf16.mxu0 %v152_v32  ;;  %v323_v35 = vsel %vm265_vm2, %v725_v33, 0.0  ;;  %v347_v52 = vpack.c.bf16 %v725_v33, %v719_v21 }
 0x370   :  { %625 = vmatprep.mubr.msk.bf16.mxu0 %vm265_vm2, %v346_v34  ;;  %324 = vadd.xlane.f32.xlu1 %v323_v35 }
 0x371   :  { %v727_v37 = vpop.eup %726  ;;  %620 = vmatpush3.bf16.msra.mxu0 %v152_v32 }
 0x372   :  { %621 = vmatprep.subr.bf16.mxu0 %v153_v36  ;;  %v332_v38 = vsel %vm265_vm2, %v727_v37, 0.0 }
 0x374   :  { %333 = vadd.xlane.f32.xlu1 %v332_v38 }
 0x375   :  { %v729_v39 = vpop.eup %728  ;;  %622 = vmatpush3.bf16.msra.mxu0 %v153_v36 }
 0x376   :  { %v326_v40 = vsel %vm265_vm2, %v729_v39, 0.0 }
 0x377   :  { %327 = vadd.xlane.f32.xlu0 %v326_v40 }
 0x378   :  { %315 = vadd.xlane.f32.xlu1 %v314_v41 }
 0x394   :  { %v289_v42 = vpop.xlane.xlu1 %288 }
 0x395   :  { %v297_v43 = vsub.f32 %v898_v63, %v289_v42 }
 0x397   :  { %v312_v46 = vmul.f32 1.442695, %v297_v43 }
 0x398   :  { %v283_v44 = vpop.xlane.xlu1 %282 }
 0x399   :  { %v295_v45 = vsub.f32 %v900_v1, %v283_v44 }
 0x39b   :  { %v308_v47 = vmul.f32 1.442695, %v295_v45 }
 0x39c   :  { %v690_v48 = vpop.permute.xlu1 %689 }
 0x39d   :  { %730 = vpow2.f32 %v308_v47  ;;  %v692_v49 = vunpack.i.h.bf16 %v690_v48  ;;  %v691_v50 = vunpack.i.l.bf16 %v690_v48 }
 0x39e   :  { %732 = vpow2.f32 %v312_v46 }
 0x39f   :  { %v154_v51 = vpack.c.bf16 %v692_v49, %v691_v50 }
 0x3a1   :  { %623 = vmatprep.subr.bf16.mxu0 %v154_v51 }
 0x3a2   :  { %624 = vmatpush3.bf16.msra.mxu0 %v154_v51 }
 0x3a3   :  { %633 = vmatprep.subr.bf16.mxu0 %v806_v61 }
 0x3a5   :  { %626 = vmatmul.mubr.msk.bf16.vlgmr.msra.gmra.mrb[4].mxu0 %vm265_vm2, %v347_v52 }
 0x3a6   :  { %634 = vmatpush3.bf16.msra.mxu0 %v714_v60 }
 0x3a7   :  { %v731_v53 = vpop.eup %730  ;;  %635 = vmatprep.subr.bf16.mxu0 %v806_v61 }
 0x3a8   :  { %v733_v54 = vpop.eup %732  ;;  %v329_v55 = vsel %vm265_vm2, %v731_v53, 0.0  ;;  %v348_v56 = vpack.c.bf16 %v731_v53, %v729_v39 }
 0x3a9   :  { %330 = vadd.xlane.f32.xlu0 %v329_v55  ;;  %v349_v57 = vpack.c.bf16 %v733_v54, %v727_v37  ;;  %v335_v58 = vsel %vm265_vm2, %v733_v54, 0.0 }
 0x3aa   :  { %629 = vmatprep.mubr.msk.bf16.mxu0 %vm265_vm2, %v348_v56  ;;  %636 = vmatpush3.bf16.msra.mxu0 %v715_v3 }
 0x3ab   :  { %637 = vmatprep.subr.bf16.mxu0 %v806_v61 }
 0x3ad   :  { %336 = vadd.xlane.f32.xlu0 %v335_v58  ;;  %630 = vmatmul.mubr.msk.bf16.gmra.mrb[8].mxu0 %vm265_vm2, %v349_v57 }
 0x3ae   :  { %638 = vmatpush3.bf16.msra.mxu0 %v716_v5  ;;  %641 = vmatprep.mubr.msk.bf16.mxu0 %vm808_vm3, %v806_v61 }
 0x3af   :  { %639 = vmatprep.subr.bf16.mxu0 %v806_v61 }
 0x3b1   :  { %318 = vadd.xlane.f32.xlu0 %v317_v59 }
 0x3b2   :  { %640 = vmatpush3.bf16.msra.mxu0 %v717_v16 }
 0x3f8   :  { %v322_v62 = vpop.xlane.xlu0 %321 }
 0x3f9   :  { %734 = vrcp.f32 %v322_v62 }
 0x3fd   :  { %v325_v0 = vpop.xlane.xlu1 %324 }
 0x3fe   :  { %736 = vrcp.f32 %v325_v0 }
 0x401   :  { %v334_v2 = vpop.xlane.xlu1 %333 }
 0x402   :  { %738 = vrcp.f32 %v334_v2 }
 0x403   :  { %v735_v7 = vpop.eup %734 }
 0x404   :  { %v328_v63 = vpop.xlane.xlu0 %327 }
 0x405   :  { %740 = vrcp.f32 %v328_v63  ;;  %v316_v30 = vpop.xlane.xlu1 %315 }
 0x408   :  { %v737_v9 = vpop.eup %736 }
 0x40c   :  { %v739_v17 = vpop.eup %738 }
 0x40f   :  { %v741_v19 = vpop.eup %740 }
 0x436   :  { %v331_v1 = vpop.xlane.xlu0 %330 }
 0x43a   :  { %v337_v4 = vpop.xlane.xlu0 %336 }
 0x43b   :  { %742 = vrcp.f32 %v337_v4 }
 0x43c   :  { %744 = vrcp.f32 %v331_v1 }
 0x43d   :  { %746 = vrcp.f32 %v316_v30 }
 0x43e   :  { %v319_v31 = vpop.xlane.xlu0 %318 }
 0x43f   :  { %748 = vrcp.f32 %v319_v31 }
 0x445   :  { %v743_v20 = vpop.eup %742 }
 0x446   :  { %v745_v22 = vpop.eup %744 }
 0x447   :  { %v747_v33 = vpop.eup %746 }
 0x449   :  { %v749_v36 = vpop.eup %748 }
 0x478   :  { %v627_v6 = vpop.f32.mrb[4].mxu0 }
 0x479   :  { %v396_v8 = vpop.f32.mrb[5].mxu0  ;;  %v429_v11 = vmul.f32 %v735_v7, %v627_v6 }
 0x47a   :  { %v628_v10 = vpop.f32.mrb[6].mxu0  ;;  %v427_v38 = vmul.f32 %v747_v33, %v396_v8 }
 0x47b   :  { %v430_v12 = vmul.f32 %v737_v9, %v628_v10  ;;  %v399_v13 = vpop.f32.mrb[7].mxu0 }
 0x47c   :  { %v428_v39 = vmul.f32 %v749_v36, %v399_v13 }
 0x47d   :  { %v693_v14 = vpack.i.bf16 %v430_v12, %v429_v11 }
 0x47f   :  { %694 = vrot.lane.b32.xlu1 %v693_v14, %s807_s24 }
 0x480   :  { %v631_v18 = vpop.f32.mrb[8].mxu0 }
 0x481   :  { %v412_v15 = vpop.f32.mrb[9].mxu0  ;;  %v433_v23 = vmul.f32 %v739_v17, %v631_v18 }
 0x482   :  { %v632_v21 = vpop.f32.mrb[10].mxu0  ;;  %v431_v26 = vmul.f32 %v741_v19, %v412_v15 }
 0x483   :  { %v434_v24 = vmul.f32 %v743_v20, %v632_v21  ;;  %v415_v25 = vpop.f32.mrb[11].mxu0 }
 0x484   :  { %v432_v27 = vmul.f32 %v745_v22, %v415_v25 }
 0x485   :  { %v703_v28 = vpack.i.bf16 %v434_v24, %v433_v23 }
 0x486   :  { %v698_v29 = vpack.i.bf16 %v432_v27, %v431_v26 }
 0x487   :  { %704 = vrot.lane.b32.xlu1 %v703_v28, %s809_s2 }
 0x488   :  { %699 = vrot.lane.b32.xlu0 %v698_v29, %s810_s27 }
 0x4f1   :  { %v695_v32 = vpop.permute.xlu1 %694 }
 0x4f2   :  { %v697_v34 = vunpack.i.h.bf16 %v695_v32  ;;  %v696_v35 = vunpack.i.l.bf16 %v695_v32 }
 0x4f4   :  { %v459_v43 = vsel %vm175_vm1, %v427_v38, %v696_v35  ;;  %v460_v44 = vsel %vm175_vm1, %v428_v39, %v697_v34 }
 0x4f9   :  { %v705_v37 = vpop.permute.xlu1 %704 }
 0x4fa   :  { %v700_v40 = vpop.permute.xlu0 %699  ;;  %v707_v45 = vunpack.i.h.bf16 %v705_v37  ;;  %v706_v46 = vunpack.i.l.bf16 %v705_v37 }
 0x4fb   :  { %v702_v41 = vunpack.i.h.bf16 %v700_v40  ;;  %v701_v42 = vunpack.i.l.bf16 %v700_v40 }
 0x4fd   :  { %v462_v47 = vsel %vm60_vm0, %v460_v44, %v702_v41  ;;  %v461_v48 = vsel %vm60_vm0, %v459_v43, %v701_v42 }
 0x4fe   :  { %v465_v49 = vsel %vm463_vm4, %v462_v47, %v707_v45  ;;  %v464_v50 = vsel %vm463_vm4, %v461_v48, %v706_v46 }
 0x4ff   :  { %v466_v51 = vpack.c.bf16 %v465_v49, %v464_v50 }
 0x501   :  { %642 = vmatmul.mubr.msk.bf16.vlgmr.msra.gmra.mrb[12].mxu0 %vm265_vm2, %v466_v51 }
 0x5d4   :  { %v536_v52 = vpop.f32.mrb[12].mxu0 }
 0x5d5   :  { %543 = vst.msk [vmem:[#allocation5] sm:$0xff] %vm60_vm0, %v536_v52  ;;  %v643_v53 = vpop.f32.mrb[13].mxu0 }
 0x5d6   :  { %v539_v54 = vpop.f32.mrb[14].mxu0 }
 0x5d7   :  { %544 = vst.msk [vmem:[#allocation5 + $0x8] sm:$0xff] %vm60_vm0, %v539_v54  ;;  %v644_v55 = vpop.f32.mrb[15].mxu0 }
 0x5d8   :  { %783 = shalt.err (!%p780_p12)
}
 0x5d9   :  { %s784_s7 = scalar_lea.hbm %s960_s4, 256 }
 0x5da   :  { %p785_p13 = scmp.ne.s32.totalorder %s960_s4, %s784_s7  ;;  %p788_p0 = scmp.lt.u32.totalorder %s784_s7, %s960_s4 }
 0x5dc   :  { %p790_p1 = pnand %p788_p0, %p785_p13 }
 0x5de   :  { %793 = shalt.err (!%p790_p1)
}
 0x5df   :  { %556 = dma.vmem_to_hbm [thread:$0]  %s551_s29, 256, %s960_s4, [#allocation4], %s799_s25, %s799_s25, %s800_s26  }
 0x5e0   :  { %796 = dma.done.wait [#allocation4], 256  }
 0x5e1   :  { %797 = vsyncadd [#allocation4], 4294967040 }
 0x5e2   :  { %560 = vsyncpa [#allocation3], 1 }
 0x5e3   :  { %561 = vsyncpa [#allocation4], 1 }

</bundles_post_ra>
